<compile_context>
chip_gen: v7x
topology: tpu7x:2x2x1
jax: 0.10.0
libtpu: 0.0.40
codegen_flags: <defaults>
</compile_context>

<pallas_src>
import jax
import jax.numpy as jnp
from jax.experimental import pallas as pl
from jax.experimental.pallas import tpu as pltpu

# ------------------------- small stand-in dimensions -------------------------
B, C, H, W = 2, 4, 16, 16     # image batch / channels / spatial
K = 3                         # conv kernel size of the vision stem
CK2 = C * K * K               # im2col patch length (36) -- kept at natural width
HWTOT = H * W                 # 256 spatial positions
DV = 32                       # vision feature dim   (stand-in for resnet50's 2048)
HH = 32                       # bert hidden size     (stand-in for 768)
DL = 16                       # language_fc out dim  (stand-in for 512)
NC = 10                       # num_classes

LANE = 128
NC_P = LANE                   # lane-dense padded class dim (unmasked output store)
B_PAD = 8                     # sublane-dense padded batch for the head matmuls / store
THW = 128                     # HWTOT tile size (reduction grid axis)
N_HW = HWTOT // THW


# --------------------------------- kernel -----------------------------------
def vlm_kernel(patch_ref,    # (B, THW, CK2)      bf16 im2col patches, this HWTOT tile
               pool_ref,     # (B_PAD, B*THW)     f32 tile-invariant per-batch sum matrix
               wc_ref,       # (CK2, DV)          bf16 vision stem conv weight (im2col form)
               bc_ref,       # (1, DV)            f32 conv bias
               cls_ref,      # (B_PAD, HH)        bf16 BERT [CLS] hidden state
               wp_ref,       # (HH, HH)           bf16 BERT pooler weight
               bp_ref,       # (1, HH)            f32 pooler bias
               wfv_ref,      # (DV, NC_P)         bf16 fc_combined rows for vision feats
               wfold_ref,    # (HH, NC_P)         bf16 language_fc folded into fc_combined
               bf_ref,       # (1, NC_P)          f32 folded bias (bf + bl @ wf_lang)
               o_ref,        # (B_PAD, NC_P)      f32 output
               acc_ref):     # (B_PAD, DV)        f32 running per-batch conv sum (scratch)
    h = pl.program_id(0)

    @pl.when(h == 0)
    def _init():
        acc_ref[...] = jnp.zeros_like(acc_ref)

    # ---- vision stem on this HWTOT tile: conv-as-matmul (bf16 MXU) + bias + ReLU (f32) ----
    x = patch_ref[...].reshape(B * THW, CK2)                         # merge leading dims
    conv = jnp.dot(x, wc_ref[...], preferred_element_type=jnp.float32)   # (B*THW, DV) f32
    conv = jnp.maximum(conv + bc_ref[...], 0.0)
    # per-batch running sum via the tiny tile-invariant ones matmul; it also scatters the
    # B real batches into the sublane-padded B_PAD-row accumulator (padded rows stay 0).
    acc_ref[...] += jnp.dot(pool_ref[...], conv,
                            preferred_element_type=jnp.float32)      # (B_PAD, DV)

    # ---- finalize: global average pool, BERT pooler, folded language head, combined fc ----
    @pl.when(h == pl.num_programs(0) - 1)
    def _finalize():
        vis = acc_ref[...] * (1.0 / HWTOT)                           # (B_PAD, DV) f32
        pooled = jnp.tanh(
            jnp.dot(cls_ref[...], wp_ref[...],
                    preferred_element_type=jnp.float32) + bp_ref[...])    # (B_PAD, HH) f32
        o_ref[...] = (
            jnp.dot(vis.astype(jnp.bfloat16), wfv_ref[...],
                    preferred_element_type=jnp.float32)
            + jnp.dot(pooled.astype(jnp.bfloat16), wfold_ref[...],
                      preferred_element_type=jnp.float32)
            + bf_ref[...])                                           # (B_PAD, NC_P)


# --------------------------------- wrapper ----------------------------------
def _im2col(image_nchw):
    # image_nchw: (B, C, H, W)  ->  patches: (B, H*W, C*K*K)
    patches = jax.lax.conv_general_dilated_patches(
        image_nchw, filter_shape=(K, K), window_strides=(1, 1), padding='SAME')
    return patches.reshape(B, CK2, HWTOT).transpose(0, 2, 1)


def _pad2d(x, rows, cols):
    r, c = x.shape
    return jnp.pad(x, ((0, rows - r), (0, cols - c)))


def prepare_params(params):
    """One-time (off hot path) weight prep: fold language_fc into fc_combined,
    lane-pad the tiny head weights, cast MXU operands to bf16."""
    wc, bc, wp, bp, wl, bl, wf, bf = params
    hi = jax.lax.Precision.HIGHEST
    wf_vis = wf[:DV, :]                                   # (DV, NC) rows for vision feats
    wf_lang = wf[DV:, :]                                  # (DL, NC) rows for language feats
    w_fold = jnp.dot(wl, wf_lang, precision=hi)           # (HH, NC) language_fc folded in
    b_fold = bf + jnp.dot(bl, wf_lang, precision=hi)      # (1, NC)  folded bias

    # tile-invariant per-batch pooling/sum matrix for one (B, THW) patch tile,
    # padded to B_PAD rows (padded rows are zero => accumulator rows stay zero).
    pool_tile = jnp.repeat(jnp.eye(B, dtype=jnp.float32), THW, axis=1)   # (B, B*THW)
    pool_tile = _pad2d(pool_tile, B_PAD, B * THW)

    return dict(
        pool=pool_tile,                                   # (B_PAD, B*THW) f32
        wc=wc.astype(jnp.bfloat16),                       # (CK2, DV)
        bc=bc,                                            # (1, DV)  f32
        wp=wp.astype(jnp.bfloat16),                       # (HH, HH)
        bp=bp,                                            # (1, HH)  f32
        wfv=_pad2d(wf_vis, DV, NC_P).astype(jnp.bfloat16),    # (DV, NC_P)
        wfold=_pad2d(w_fold, HH, NC_P).astype(jnp.bfloat16),  # (HH, NC_P)
        bf=_pad2d(b_fold, 1, NC_P),                       # (1, NC_P) f32
    )


@jax.jit
def vlm_forward(image_nchw, cls_hidden, p):
    # activation prep (data-dependent, stays in-jit; im2col fuses with the cast)
    patches = _im2col(image_nchw).astype(jnp.bfloat16)                # (B, HWTOT, CK2)
    cls_p = _pad2d(cls_hidden, B_PAD, HH).astype(jnp.bfloat16)        # (B_PAD, HH)

    out = pl.pallas_call(
        vlm_kernel,
        out_shape=jax.ShapeDtypeStruct((B_PAD, NC_P), jnp.float32),
        grid_spec=pltpu.PrefetchScalarGridSpec(
            num_scalar_prefetch=0,
            grid=(N_HW,),                                  # HWTOT reduction axis (last)
            in_specs=[
                pl.BlockSpec((B, THW, CK2), lambda h: (0, h, 0)),   # patches: HWTOT-tiled
                pl.BlockSpec((B_PAD, B * THW), lambda h: (0, 0)),   # pool_tile (resident)
                pl.BlockSpec((CK2, DV), lambda h: (0, 0)),          # wc
                pl.BlockSpec((1, DV), lambda h: (0, 0)),            # bc
                pl.BlockSpec((B_PAD, HH), lambda h: (0, 0)),        # cls
                pl.BlockSpec((HH, HH), lambda h: (0, 0)),           # wp
                pl.BlockSpec((1, HH), lambda h: (0, 0)),            # bp
                pl.BlockSpec((DV, NC_P), lambda h: (0, 0)),         # wf (vision rows)
                pl.BlockSpec((HH, NC_P), lambda h: (0, 0)),         # folded language head
                pl.BlockSpec((1, NC_P), lambda h: (0, 0)),          # folded bias
            ],
            out_specs=pl.BlockSpec((B_PAD, NC_P), lambda h: (0, 0)),
            scratch_shapes=[pltpu.VMEM((B_PAD, DV), jnp.float32)],
        ),
        compiler_params=pltpu.CompilerParams(
            dimension_semantics=("arbitrary",)),           # reduction axis
    )(patches, p['pool'], p['wc'], p['bc'], cls_p, p['wp'], p['bp'],
      p['wfv'], p['wfold'], p['bf'])

    return out[:B, :NC]


# --------------------------- plain-JAX reference -----------------------------
def reference_forward(image_nchw, cls_hidden, params):
    wc, bc, wp, bp, wl, bl, wf, bf = params
    hi = jax.lax.Precision.HIGHEST
    patches = _im2col(image_nchw)
    conv = jnp.maximum(jnp.einsum('bpk,kd->bpd', patches, wc, precision=hi) + bc, 0.0)
    vis = conv.mean(axis=1)                                        # [B, DV]
    pooled = jnp.tanh(jnp.dot(cls_hidden, wp, precision=hi) + bp)  # BERT pooler
    lang = jnp.dot(pooled, wl, precision=hi) + bl                  # language_fc
    comb = jnp.concatenate([vis, lang], axis=1)                    # torch.cat(dim=1)
    return jnp.dot(comb, wf, precision=hi) + bf                    # fc_combined


# ----------------------------------- main ------------------------------------
if __name__ == "__main__":
    key = jax.random.PRNGKey(0)
    ks = jax.random.split(key, 10)
    scale = 0.05

    image = jax.random.normal(ks[0], (B, C, H, W), jnp.float32)     # NCHW, like PyTorch
    cls_hidden = jax.random.normal(ks[1], (B, HH), jnp.float32)     # stand-in BERT [CLS] state

    params = (
        scale * jax.random.normal(ks[2], (CK2, DV), jnp.float32),   # conv weight (im2col form)
        scale * jax.random.normal(ks[3], (1, DV), jnp.float32),     # conv bias
        scale * jax.random.normal(ks[4], (HH, HH), jnp.float32),    # pooler weight
        scale * jax.random.normal(ks[5], (1, HH), jnp.float32),     # pooler bias
        scale * jax.random.normal(ks[6], (HH, DL), jnp.float32),    # language_fc weight
        scale * jax.random.normal(ks[7], (1, DL), jnp.float32),     # language_fc bias
        scale * jax.random.normal(ks[8], (DV + DL, NC), jnp.float32),  # fc_combined weight
        scale * jax.random.normal(ks[9], (1, NC), jnp.float32),     # fc_combined bias
    )

    prepped = jax.tree_util.tree_map(jax.block_until_ready, prepare_params(params))

    out = jax.block_until_ready(vlm_forward(image, cls_hidden, prepped))
    ref = jax.block_until_ready(reference_forward(image, cls_hidden, params))

    assert out.shape == (B, NC), out.shape
    # bf16 MXU operands vs f32-HIGHEST reference => looser tolerance than pure-f32.
    assert jnp.allclose(out, ref, atol=1e-2, rtol=1e-2), (out, ref)
    print("KERNEL_OK")
</pallas_src>

<mosaic_0001>
module attributes {stable_mosaic.version = 11 : i64} {
  func.func @vlm_kernel(%arg0: i32, %arg1: memref<2x128x36xbf16, #tpu.memory_space<vmem>>, %arg2: memref<8x256xf32, #tpu.memory_space<vmem>>, %arg3: memref<36x32xbf16, #tpu.memory_space<vmem>>, %arg4: memref<1x32xf32, #tpu.memory_space<vmem>>, %arg5: memref<8x32xbf16, #tpu.memory_space<vmem>>, %arg6: memref<32x32xbf16, #tpu.memory_space<vmem>>, %arg7: memref<1x32xf32, #tpu.memory_space<vmem>>, %arg8: memref<32x128xbf16, #tpu.memory_space<vmem>>, %arg9: memref<32x128xbf16, #tpu.memory_space<vmem>>, %arg10: memref<1x128xf32, #tpu.memory_space<vmem>>, %arg11: memref<8x128xf32, #tpu.memory_space<vmem>>, %arg12: memref<8x32xf32, #tpu.memory_space<vmem>>) attributes {dimension_semantics = [#tpu.dimension_semantics<arbitrary>], iteration_bounds = array<i64: 2>, scalar_prefetch = 0 : i64, scratch_operands = 1 : i64, tpu.core_type = #tpu.core_type<tc>, window_params = [{transform_indices = @transform_0, window_bounds = array<i64: 2, 128, 36>}, {pipeline_mode = #tpu.pipeline_mode<synchronous>, transform_indices = @transform_1, window_bounds = array<i64: 8, 256>}, {pipeline_mode = #tpu.pipeline_mode<synchronous>, transform_indices = @transform_2, window_bounds = array<i64: 36, 32>}, {pipeline_mode = #tpu.pipeline_mode<synchronous>, transform_indices = @transform_3, window_bounds = array<i64: 1, 32>}, {pipeline_mode = #tpu.pipeline_mode<synchronous>, transform_indices = @transform_4, window_bounds = array<i64: 8, 32>}, {pipeline_mode = #tpu.pipeline_mode<synchronous>, transform_indices = @transform_5, window_bounds = array<i64: 32, 32>}, {pipeline_mode = #tpu.pipeline_mode<synchronous>, transform_indices = @transform_6, window_bounds = array<i64: 1, 32>}, {pipeline_mode = #tpu.pipeline_mode<synchronous>, transform_indices = @transform_7, window_bounds = array<i64: 32, 128>}, {pipeline_mode = #tpu.pipeline_mode<synchronous>, transform_indices = @transform_8, window_bounds = array<i64: 32, 128>}, {pipeline_mode = #tpu.pipeline_mode<synchronous>, transform_indices = @transform_9, window_bounds = array<i64: 1, 128>}, {pipeline_mode = #tpu.pipeline_mode<synchronous>, transform_indices = @transform_10, window_bounds = array<i64: 8, 128>}]} {
    %c0_i32 = arith.constant 0 : i32
    %0 = arith.cmpi eq, %arg0, %c0_i32 : i32
    %1 = arith.extui %0 : i1 to i32
    %c0_i32_0 = arith.constant 0 : i32
    %2 = arith.cmpi ne, %1, %c0_i32_0 : i32
    scf.if %2 {
      %cst_16 = arith.constant 0.000000e+00 : f32
      %20 = vector.broadcast %cst_16 : f32 to vector<8x32xf32>
      %c0_17 = arith.constant 0 : index
      %c0_18 = arith.constant 0 : index
      %21 = vector.load %arg12[%c0_17, %c0_18] : memref<8x32xf32, #tpu.memory_space<vmem>>, vector<8x32xf32>
      tpu.vector_store %arg12[%c0_17, %c0_18], %20 {strides = array<i32>} : memref<8x32xf32, #tpu.memory_space<vmem>>, vector<8x32xf32>,
    } else {
    }
    %c0 = arith.constant 0 : index
    %c0_1 = arith.constant 0 : index
    %c0_2 = arith.constant 0 : index
    %3 = vector.load %arg1[%c0, %c0_1, %c0_2] : memref<2x128x36xbf16, #tpu.memory_space<vmem>>, vector<2x128x36xbf16>
    %4 = vector.shape_cast %3 : vector<2x128x36xbf16> to vector<256x36xbf16>
    %c0_3 = arith.constant 0 : index
    %c0_4 = arith.constant 0 : index
    %5 = vector.load %arg3[%c0_3, %c0_4] : memref<36x32xbf16, #tpu.memory_space<vmem>>, vector<36x32xbf16>
    %cst = arith.constant dense<0.000000e+00> : vector<256x32xf32>
    %6 = tpu.matmul %4, %5, %cst {dimension_numbers = #tpu.dot_dimension_numbers<[1], [0], [0], [1], [0, 0, 1, 1], [], []>} : vector<256x36xbf16>, vector<36x32xbf16>, vector<256x32xf32> -> vector<256x32xf32>
    %c0_5 = arith.constant 0 : index
    %c0_6 = arith.constant 0 : index
    %7 = vector.load %arg4[%c0_5, %c0_6] : memref<1x32xf32, #tpu.memory_space<vmem>>, vector<1x32xf32>
    %8 = vector.broadcast %7 : vector<1x32xf32> to vector<256x32xf32>
    %9 = arith.addf %6, %8 : vector<256x32xf32>
    %cst_7 = arith.constant 0.000000e+00 : f32
    %10 = vector.broadcast %cst_7 : f32 to vector<256x32xf32>
    %11 = arith.maximumf %9, %10 : vector<256x32xf32>
    %c0_8 = arith.constant 0 : index
    %c0_9 = arith.constant 0 : index
    %12 = vector.load %arg12[%c0_8, %c0_9] : memref<8x32xf32, #tpu.memory_space<vmem>>, vector<8x32xf32>
    %c0_10 = arith.constant 0 : index
    %c0_11 = arith.constant 0 : index
    %13 = vector.load %arg2[%c0_10, %c0_11] : memref<8x256xf32, #tpu.memory_space<vmem>>, vector<8x256xf32>
    %cst_12 = arith.constant dense<0.000000e+00> : vector<8x32xf32>
    %14 = tpu.matmul %13, %11, %cst_12 {dimension_numbers = #tpu.dot_dimension_numbers<[1], [0], [0], [1], [0, 0, 1, 1], [], []>} : vector<8x256xf32>, vector<256x32xf32>, vector<8x32xf32> -> vector<8x32xf32>
    %15 = arith.addf %12, %14 : vector<8x32xf32>
    %c0_13 = arith.constant 0 : index
    %c0_14 = arith.constant 0 : index
    %16 = vector.load %arg12[%c0_13, %c0_14] : memref<8x32xf32, #tpu.memory_space<vmem>>, vector<8x32xf32>
    tpu.vector_store %arg12[%c0_13, %c0_14], %15 {strides = array<i32>} : memref<8x32xf32, #tpu.memory_space<vmem>>, vector<8x32xf32>,
    %c1_i32 = arith.constant 1 : i32
    %17 = arith.cmpi eq, %arg0, %c1_i32 : i32
    %18 = arith.extui %17 : i1 to i32
    %c0_i32_15 = arith.constant 0 : i32
    %19 = arith.cmpi ne, %18, %c0_i32_15 : i32
    scf.if %19 {
      %c0_16 = arith.constant 0 : index
      %c0_17 = arith.constant 0 : index
      %20 = vector.load %arg12[%c0_16, %c0_17] : memref<8x32xf32, #tpu.memory_space<vmem>>, vector<8x32xf32>
      %cst_18 = arith.constant 3.906250e-03 : f32
      %21 = vector.broadcast %cst_18 : f32 to vector<8x32xf32>
      %22 = arith.mulf %20, %21 : vector<8x32xf32>
      %c0_19 = arith.constant 0 : index
      %c0_20 = arith.constant 0 : index
      %23 = vector.load %arg5[%c0_19, %c0_20] : memref<8x32xbf16, #tpu.memory_space<vmem>>, vector<8x32xbf16>
      %c0_21 = arith.constant 0 : index
      %c0_22 = arith.constant 0 : index
      %24 = vector.load %arg6[%c0_21, %c0_22] : memref<32x32xbf16, #tpu.memory_space<vmem>>, vector<32x32xbf16>
      %cst_23 = arith.constant dense<0.000000e+00> : vector<8x32xf32>
      %25 = tpu.matmul %23, %24, %cst_23 {dimension_numbers = #tpu.dot_dimension_numbers<[1], [0], [0], [1], [0, 0, 1, 1], [], []>} : vector<8x32xbf16>, vector<32x32xbf16>, vector<8x32xf32> -> vector<8x32xf32>
      %c0_24 = arith.constant 0 : index
      %c0_25 = arith.constant 0 : index
      %26 = vector.load %arg7[%c0_24, %c0_25] : memref<1x32xf32, #tpu.memory_space<vmem>>, vector<1x32xf32>
      %27 = vector.broadcast %26 : vector<1x32xf32> to vector<8x32xf32>
      %28 = arith.addf %25, %27 : vector<8x32xf32>
      %29 = math.tanh %28 : vector<8x32xf32>
      %30 = arith.truncf %22 : vector<8x32xf32> to vector<8x32xbf16>
      %c0_26 = arith.constant 0 : index
      %c0_27 = arith.constant 0 : index
      %31 = vector.load %arg8[%c0_26, %c0_27] : memref<32x128xbf16, #tpu.memory_space<vmem>>, vector<32x128xbf16>
      %cst_28 = arith.constant dense<0.000000e+00> : vector<8x128xf32>
      %32 = tpu.matmul %30, %31, %cst_28 {dimension_numbers = #tpu.dot_dimension_numbers<[1], [0], [0], [1], [0, 0, 1, 1], [], []>} : vector<8x32xbf16>, vector<32x128xbf16>, vector<8x128xf32> -> vector<8x128xf32>
      %33 = arith.truncf %29 : vector<8x32xf32> to vector<8x32xbf16>
      %c0_29 = arith.constant 0 : index
      %c0_30 = arith.constant 0 : index
      %34 = vector.load %arg9[%c0_29, %c0_30] : memref<32x128xbf16, #tpu.memory_space<vmem>>, vector<32x128xbf16>
      %cst_31 = arith.constant dense<0.000000e+00> : vector<8x128xf32>
      %35 = tpu.matmul %33, %34, %cst_31 {dimension_numbers = #tpu.dot_dimension_numbers<[1], [0], [0], [1], [0, 0, 1, 1], [], []>} : vector<8x32xbf16>, vector<32x128xbf16>, vector<8x128xf32> -> vector<8x128xf32>
      %36 = arith.addf %32, %35 : vector<8x128xf32>
      %c0_32 = arith.constant 0 : index
      %c0_33 = arith.constant 0 : index
      %37 = vector.load %arg10[%c0_32, %c0_33] : memref<1x128xf32, #tpu.memory_space<vmem>>, vector<1x128xf32>
      %38 = vector.broadcast %37 : vector<1x128xf32> to vector<8x128xf32>
      %39 = arith.addf %36, %38 : vector<8x128xf32>
      %c0_34 = arith.constant 0 : index
      %c0_35 = arith.constant 0 : index
      %40 = vector.load %arg11[%c0_34, %c0_35] : memref<8x128xf32, #tpu.memory_space<vmem>>, vector<8x128xf32>
      tpu.vector_store %arg11[%c0_34, %c0_35], %39 {strides = array<i32>} : memref<8x128xf32, #tpu.memory_space<vmem>>, vector<8x128xf32>,
    } else {
    }
    return
  }
  func.func @transform_0(%arg0: i32) -> (i32, i32, i32) {
    %c0_i32 = arith.constant 0 : i32
    %c0_i32_0 = arith.constant 0 : i32
    %c0_i32_1 = arith.constant 0 : i32
    return %c0_i32, %arg0, %c0_i32_0 : i32, i32, i32
  }
  func.func @transform_1(%arg0: i32) -> (i32, i32) {
    %c0_i32 = arith.constant 0 : i32
    %c0_i32_0 = arith.constant 0 : i32
    %c0_i32_1 = arith.constant 0 : i32
    return %c0_i32, %c0_i32_0 : i32, i32
  }
  func.func @transform_2(%arg0: i32) -> (i32, i32) {
    %c0_i32 = arith.constant 0 : i32
    %c0_i32_0 = arith.constant 0 : i32
    %c0_i32_1 = arith.constant 0 : i32
    return %c0_i32, %c0_i32_0 : i32, i32
  }
  func.func @transform_3(%arg0: i32) -> (i32, i32) {
    %c0_i32 = arith.constant 0 : i32
    %c0_i32_0 = arith.constant 0 : i32
    %c0_i32_1 = arith.constant 0 : i32
    return %c0_i32, %c0_i32_0 : i32, i32
  }
  func.func @transform_4(%arg0: i32) -> (i32, i32) {
    %c0_i32 = arith.constant 0 : i32
    %c0_i32_0 = arith.constant 0 : i32
    %c0_i32_1 = arith.constant 0 : i32
    return %c0_i32, %c0_i32_0 : i32, i32
  }
  func.func @transform_5(%arg0: i32) -> (i32, i32) {
    %c0_i32 = arith.constant 0 : i32
    %c0_i32_0 = arith.constant 0 : i32
    %c0_i32_1 = arith.constant 0 : i32
    return %c0_i32, %c0_i32_0 : i32, i32
  }
  func.func @transform_6(%arg0: i32) -> (i32, i32) {
    %c0_i32 = arith.constant 0 : i32
    %c0_i32_0 = arith.constant 0 : i32
    %c0_i32_1 = arith.constant 0 : i32
    return %c0_i32, %c0_i32_0 : i32, i32
  }
  func.func @transform_7(%arg0: i32) -> (i32, i32) {
    %c0_i32 = arith.constant 0 : i32
    %c0_i32_0 = arith.constant 0 : i32
    %c0_i32_1 = arith.constant 0 : i32
    return %c0_i32, %c0_i32_0 : i32, i32
  }
  func.func @transform_8(%arg0: i32) -> (i32, i32) {
    %c0_i32 = arith.constant 0 : i32
    %c0_i32_0 = arith.constant 0 : i32
    %c0_i32_1 = arith.constant 0 : i32
    return %c0_i32, %c0_i32_0 : i32, i32
  }
  func.func @transform_9(%arg0: i32) -> (i32, i32) {
    %c0_i32 = arith.constant 0 : i32
    %c0_i32_0 = arith.constant 0 : i32
    %c0_i32_1 = arith.constant 0 : i32
    return %c0_i32, %c0_i32_0 : i32, i32
  }
  func.func @transform_10(%arg0: i32) -> (i32, i32) {
    %c0_i32 = arith.constant 0 : i32
    %c0_i32_0 = arith.constant 0 : i32
    %c0_i32_1 = arith.constant 0 : i32
    return %c0_i32, %c0_i32_0 : i32, i32
  }
}

</mosaic_0001>

<bundles_post_ra>
// kernel: vlm_forward.1
= control target key start
LH: loop header
LB: loop body
LE: loop exit
PB: predicated region body
PF: predicated region fallthrough
CT: control target
= control target key end

     0   :  { %s1578_s13 = smov 0   ;;  %s1580_s14 = smov 0   ;;  %s1767_s0 = inlined_call_operand.vmem [shape: bf16[2,256,36], index: 0, kind: input, shape index: {}]   ;;  %s1768_s1 = inlined_call_operand.vmem [shape: f32[8,256], index: 1, kind: input, shape index: {}]   ;;  %s1769_s2 = inlined_call_operand.vmem [shape: bf16[36,32], index: 2, kind: input, shape index: {}]   ;;  %s1770_s3 = inlined_call_operand.vmem [shape: f32[1,32], index: 3, kind: input, shape index: {}]   ;;  %s1771_s4 = inlined_call_operand.vmem [shape: bf16[8,32], index: 4, kind: input, shape index: {}]   ;;  %s1772_s5 = inlined_call_operand.vmem [shape: bf16[32,32], index: 5, kind: input, shape index: {}]   ;;  %s1773_s6 = inlined_call_operand.vmem [shape: f32[1,32], index: 6, kind: input, shape index: {}]   ;;  %s1774_s7 = inlined_call_operand.vmem [shape: bf16[32,128], index: 7, kind: input, shape index: {}]   ;;  %s1775_s8 = inlined_call_operand.vmem [shape: bf16[32,128], index: 8, kind: input, shape index: {}]   ;;  %s1776_s9 = inlined_call_operand.vmem [shape: f32[1,128], index: 9, kind: input, shape index: {}]   ;;  %s1777_s10 = inlined_call_operand.vmem [shape: f32[8,128], index: 10, kind: output, shape index: {}]  }
   0x1   :  { %s1582_s15 = smov 0  }
   0x2 LB: > { %s1217_s16 = sadd.s32 4294967295, %s1518_s15   ;;  %s1595_s17 = sadd.s32 1, %s1518_s15   ;;  %s1518_s15 = sphi %s1582_s15, %s1780_s15   ;;  %s1514_s14 = sphi %s1580_s14, %s1779_s14   ;;  %s1510_s13 = sphi %s1578_s13, %s1778_s13  }
   0x3   : > { %s24_s18 = ssub.s32 %s1518_s15, %s1595_s17  ;;  %s27_s19 = sadd.s32 1, %s1514_s14 }
   0x4   : > { %p25_p0 = scmp.eq.s32.totalorder %s24_s18, 0  ;;  %p34_p1 = scmp.ne.s32.totalorder %s1514_s14, %s1510_s13 }
   0x5   : > { %p35_p2 = scmp.eq.s32.totalorder %s1518_s15, 0  ;;  %p1219_p4 = scmp.ge.s32.totalorder %s1518_s15, 2 }
   0x6   : > { %s1604_s20 = scalar_select %p25_p0, %s1514_s14, %s27_s19  }
   0x7   : > { %p36_p3 = por %p35_p2, %p34_p1  ;;  %297 = sbr.rel (%p1219_p4) target bundleno = 26 (0x1a), region = 52 }
   0xe   : > { %300 = sbr.rel (!%p36_p3) target bundleno = 26 (0x1a), region = 56  ;;  %s302_s21 = sand.u32 (%p36_p3), 1, %s1514_s14  }
   0xf   : > { %s1276_s22 = sshll.u32 (%p36_p3), %s1518_s15, 6  ;;  %s1220_s23 = sshll.u32 (%p36_p3), %s302_s21, 7 }
  0x10   : > { %s1612_s26 = scalar_lea.vmem (%p36_p3), %s1767_s0, %s1276_s22  ;;  %s304_s27 = scalar_lea.vmem (%p36_p3), [#allocation3], %s1220_s23 }
  0x11   : > { %v323_v0 = vld [vmem:[%s1612_s26] sm:$0xff] (%p36_p3)   ;;  %v327_v1 = vld [vmem:[%s1612_s26 + $0x8] sm:$0xff] (%p36_p3)   ;;  %v331_v2 = vld [vmem:[%s1612_s26 + $0x10] sm:$0xff] (%p36_p3)  }
  0x12   : > { %324 = vst [vmem:[%s304_s27] sm:$0xff] (%p36_p3), %v323_v0   ;;  %328 = vst [vmem:[%s304_s27 + $0x8] sm:$0xff] (%p36_p3), %v327_v1   ;;  %v335_v3 = vld [vmem:[%s1612_s26 + $0x18] sm:$0xff] (%p36_p3)   ;;  %v339_v4 = vld [vmem:[%s1612_s26 + $0x20] sm:$0xff] (%p36_p3)  }
  0x13   : > { %332 = vst [vmem:[%s304_s27 + $0x10] sm:$0xff] (%p36_p3), %v331_v2   ;;  %v343_v5 = vld [vmem:[%s1612_s26 + $0x28] sm:$0xff] (%p36_p3)   ;;  %336 = vst [vmem:[%s304_s27 + $0x18] sm:$0xff] (%p36_p3), %v335_v3   ;;  %v347_v6 = vld [vmem:[%s1612_s26 + $0x30] sm:$0xff] (%p36_p3)  }
  0x14   : > { %340 = vst [vmem:[%s304_s27 + $0x20] sm:$0xff] (%p36_p3), %v339_v4   ;;  %344 = vst [vmem:[%s304_s27 + $0x28] sm:$0xff] (%p36_p3), %v343_v5   ;;  %v351_v7 = vld [vmem:[%s1612_s26 + $0x38] sm:$0xff] (%p36_p3)   ;;  %v355_v8 = vld [vmem:[%s1612_s26 + $0x80] sm:$0xff] (%p36_p3)  }
  0x15   : > { %348 = vst [vmem:[%s304_s27 + $0x30] sm:$0xff] %v347_v6   ;;  %352 = vst [vmem:[%s304_s27 + $0x38] sm:$0xff] %v351_v7   ;;  %v359_v9 = vld [vmem:[%s1612_s26 + $0x88] sm:$0xff]   ;;  %v363_v10 = vld [vmem:[%s1612_s26 + $0x90] sm:$0xff]  }
  0x16   : > { %356 = vst [vmem:[%s304_s27 + $0x40] sm:$0xff] %v355_v8   ;;  %v367_v11 = vld [vmem:[%s1612_s26 + $0x98] sm:$0xff]   ;;  %360 = vst [vmem:[%s304_s27 + $0x48] sm:$0xff] %v359_v9   ;;  %v371_v12 = vld [vmem:[%s1612_s26 + $0xa0] sm:$0xff]  }
  0x17   : > { %364 = vst [vmem:[%s304_s27 + $0x50] sm:$0xff] %v363_v10   ;;  %368 = vst [vmem:[%s304_s27 + $0x58] sm:$0xff] %v367_v11   ;;  %v375_v13 = vld [vmem:[%s1612_s26 + $0xa8] sm:$0xff]   ;;  %v379_v14 = vld [vmem:[%s1612_s26 + $0xb0] sm:$0xff]  }
  0x18   : > { %372 = vst [vmem:[%s304_s27 + $0x60] sm:$0xff] %v371_v12   ;;  %376 = vst [vmem:[%s304_s27 + $0x68] sm:$0xff] %v375_v13   ;;  %v383_v15 = vld [vmem:[%s1612_s26 + $0xb8] sm:$0xff]  }
  0x19   : > { %380 = vst [vmem:[%s304_s27 + $0x70] sm:$0xff] %v379_v14   ;;  %384 = vst [vmem:[%s304_s27 + $0x78] sm:$0xff] %v383_v15  }
  0x1a PF: > { %p1223_p5 = scmp.ge.s32.totalorder %s1518_s15, 1  ;;  %p472_p6 = scmp.lt.s32.totalorder %s1518_s15, 3 }
  0x1c   : > { %p473_p7 = pnand %p1223_p5, %p472_p6 }
  0x1d   : > { %s479_s28 = sand.u32 (!%p473_p7), 1, %s1510_s13   ;;  %p1225_p8 = scmp.ne.s32.totalorder (!%p473_p7), %s1217_s16, 0 }
  0x1e   : > { %476 = sbr.rel (%p473_p7) target bundleno = 756 (0x2f4), region = 97  ;;  %s1224_s29 = sshll.u32 (!%p473_p7), %s479_s28, 7 }
  0x1f   : > { %s1633_s30 = scalar_lea.vmem (!%p473_p7), [#allocation3], %s1224_s29 }
  0x25   : > { %516 = sbr.rel (%p1225_p8) target bundleno = 44 (0x2c), region = 105  ;;  %vm517_vm0 = vcmask (!%p1225_p8), 261120   ;;  %v1520_v16 = vmov (!%p1225_p8), 0.0  }
  0x26   : > { %518 = vst.msk [vmem:[#allocation2] sm:$0xff] (!%p1225_p8), %vm517_vm0, %v1520_v16 }
  0x2c PF: > { %v1469_v17 = vld [vmem:[%s1769_s2] sm:$0xff]   ;;  %v1470_v18 = vld [vmem:[%s1769_s2 + $0x8] sm:$0xff]   ;;  %vm658_vm1 = vcmask 293888   ;;  %v1471_v19 = vld [vmem:[%s1769_s2 + $0x10] ss:$0 sps:$4 sm:$0x33]  }
  0x2d   : > { %1340 = vmatprep.subr.bf16.mxu0 %v1469_v17  ;;  %1434 = vmatprep.subr.bf16.mxu1 %v1469_v17  ;;  %v1472_v20 = vld [vmem:[%s1633_s30] sm:$0xff]   ;;  %vm707_vm2 = vcmask 1041408   ;;  %v1474_v23 = vld [vmem:[%s1633_s30 + $0x8] sm:$0xff]   ;;  %v1476_v25 = vld [vmem:[%s1633_s30 + $0x10] sm:$0xff]   ;;  %vm978_vm3 = vcmask 261120   ;;  %p1262_p9 = scmp.ne.s32.totalorder %s1217_s16, 1 }
  0x2e   : > { %1341 = vmatpush3.bf16.msra.mxu0 %v1469_v17  ;;  %1437 = vmatpush3.bf16.msra.mxu1 %v1469_v17  ;;  %v1473_v21 = vld [vmem:[%s1633_s30 + $0x40] sm:$0xff]   ;;  %v709_v22 = vsel %vm707_vm2, %v1471_v19, 0  ;;  %v1475_v24 = vld [vmem:[%s1633_s30 + $0x48] sm:$0xff]   ;;  %v1477_v26 = vld [vmem:[%s1633_s30 + $0x50] sm:$0xff]   ;;  %vm1522_vm4 = vmmov (!%p1262_p9), 0  }
  0x2f   : > { %1342 = vmatprep.subr.bf16.mxu0 %v1470_v18  ;;  %1435 = vmatprep.subr.bf16.mxu1 %v1470_v18  ;;  %v1478_v27 = vld [vmem:[%s1633_s30 + $0x18] sm:$0xff]   ;;  %v1480_v29 = vld [vmem:[%s1633_s30 + $0x20] sm:$0xff]   ;;  %v1482_v31 = vld [vmem:[%s1633_s30 + $0x28] sm:$0xff]  }
  0x30   : > { %1346 = vmatprep.mubr.msk.bf16.mxu0 %vm658_vm1, %v1472_v20  ;;  %1362 = vmatprep.mubr.msk.bf16.mxu1 %vm658_vm1, %v1473_v21  ;;  %v1479_v28 = vld [vmem:[%s1633_s30 + $0x58] sm:$0xff]   ;;  %v1481_v30 = vld [vmem:[%s1633_s30 + $0x60] sm:$0xff]   ;;  %v1483_v32 = vld [vmem:[%s1633_s30 + $0x68] sm:$0xff]  }
  0x31   : > { %v1484_v33 = vld [vmem:[%s1633_s30 + $0x30] sm:$0xff]   ;;  %v1486_v35 = vld [vmem:[%s1633_s30 + $0x38] sm:$0xff]   ;;  %v906_v37 = vld [vmem:[%s1768_s1 + $0x8] sm:$0xff] }
  0x32   : > { %1343 = vmatpush3.bf16.msra.mxu0 %v1470_v18  ;;  %1438 = vmatpush3.bf16.msra.mxu1 %v1470_v18  ;;  %v1485_v34 = vld [vmem:[%s1633_s30 + $0x70] sm:$0xff]   ;;  %v1487_v36 = vld [vmem:[%s1633_s30 + $0x78] sm:$0xff]  }
  0x33   : > { %1440 = vmatprep.subr.msk.bf16.mxu0 %vm707_vm2, %v1471_v19  ;;  %1441 = vmatprep.subr.msk.bf16.mxu1 %vm707_vm2, %v1471_v19  ;;  %v1684_v38 = vld [vmem:[%s1770_s3] ss:$0 sm:$0xff] }
  0x36   : > { %1345 = vmatpush3.bf16.msra.mxu0 %v709_v22  ;;  %1439 = vmatpush3.bf16.msra.mxu1 %v709_v22 }
  0x39   : > { %1347 = vmatmul.mubr.msk.bf16.vlgmr.msra.gmra.mrb[0].mxu0 %vm658_vm1, %v1474_v23  ;;  %1363 = vmatmul.mubr.msk.bf16.vlgmr.msra.gmra.mrb[0].mxu1 %vm658_vm1, %v1475_v24 }
  0x3a   : > { %1350 = vmatprep.mubr.msk.bf16.mxu0 %vm658_vm1, %v1476_v25  ;;  %1366 = vmatprep.mubr.msk.bf16.mxu1 %vm658_vm1, %v1477_v26 }
  0x41   : > { %1351 = vmatmul.mubr.msk.bf16.gmra.mrb[4].mxu0 %vm658_vm1, %v1478_v27  ;;  %1367 = vmatmul.mubr.msk.bf16.gmra.mrb[4].mxu1 %vm658_vm1, %v1479_v28 }
  0x42   : > { %1354 = vmatprep.mubr.msk.bf16.mxu0 %vm658_vm1, %v1480_v29  ;;  %1370 = vmatprep.mubr.msk.bf16.mxu1 %vm658_vm1, %v1481_v30 }
  0x49   : > { %1355 = vmatmul.mubr.msk.bf16.gmra.mrb[8].mxu0 %vm658_vm1, %v1482_v31  ;;  %1371 = vmatmul.mubr.msk.bf16.gmra.mrb[8].mxu1 %vm658_vm1, %v1483_v32 }
  0x4a   : > { %1358 = vmatprep.mubr.msk.bf16.mxu0 %vm658_vm1, %v1484_v33  ;;  %1374 = vmatprep.mubr.msk.bf16.mxu1 %vm658_vm1, %v1485_v34 }
  0x51   : > { %1359 = vmatmul.mubr.msk.bf16.gmra.mrb[12].mxu0 %vm658_vm1, %v1486_v35  ;;  %1375 = vmatmul.mubr.msk.bf16.gmra.mrb[12].mxu1 %vm658_vm1, %v1487_v36 }
  0x52   : > { %971 = vmatprep.mubr.f32.mxu1 %v906_v37 }
 0x10c   : > { %v1348_v39 = vpop.f32.mrb[0].mxu0  ;;  %v1364_v40 = vpop.f32.mrb[0].mxu1 }
 0x10d   : > { %v754_v41 = vadd.f32 %v1348_v39, %v1684_v38  ;;  %v818_v42 = vadd.f32 %v1364_v40, %v1684_v38  ;;  %v745_v43 = vpop.f32.mrb[1].mxu0  ;;  %v809_v44 = vpop.f32.mrb[1].mxu1 }
 0x10e   : > { %v746_v45 = vadd.f32 %v1684_v38, %v745_v43  ;;  %v810_v46 = vadd.f32 %v1684_v38, %v809_v44  ;;  %v1349_v47 = vpop.f32.mrb[2].mxu0  ;;  %v1365_v48 = vpop.f32.mrb[2].mxu1 }
 0x10f   : > { %v874_v49 = vmax.f32 %v754_v41, 0.0  ;;  %v757_v50 = vadd.f32 %v1349_v47, %v1684_v38  ;;  %v821_v51 = vadd.f32 %v1365_v48, %v1684_v38  ;;  %v748_v52 = vpop.f32.mrb[3].mxu0  ;;  %v812_v53 = vpop.f32.mrb[3].mxu1  ;;  %v890_v56 = vmax.f32 %v818_v42, 0.0 }
 0x110   : > { %v749_v54 = vadd.f32 %v1684_v38, %v748_v52  ;;  %v813_v55 = vadd.f32 %v1684_v38, %v812_v53  ;;  %v872_v59 = vmax.f32 %v746_v45, 0.0  ;;  %v888_v60 = vmax.f32 %v810_v46, 0.0 }
 0x111   : > { %v875_v57 = vmax.f32 %v757_v50, 0.0  ;;  %v891_v58 = vmax.f32 %v821_v51, 0.0 }
 0x112   : > { %v873_v61 = vmax.f32 %v749_v54, 0.0  ;;  %v889_v62 = vmax.f32 %v813_v55, 0.0 }
 0x113   : > { %v1408_v63 = vpack.c.bf16 %v875_v57, %v874_v49  ;;  %v1406_v0 = vpack.c.bf16 %v891_v58, %v890_v56 }
 0x114   : > { %v1404_v1 = vpack.c.bf16 %v873_v61, %v872_v59  ;;  %v1402_v2 = vpack.c.bf16 %v889_v62, %v888_v60  ;;  %v1352_v3 = vpop.f32.mrb[4].mxu0  ;;  %v1368_v4 = vpop.f32.mrb[4].mxu1 }
 0x115   : > { %v770_v5 = vadd.f32 %v1352_v3, %v1684_v38  ;;  %v834_v6 = vadd.f32 %v1368_v4, %v1684_v38  ;;  %v761_v7 = vpop.f32.mrb[5].mxu0  ;;  %v825_v8 = vpop.f32.mrb[5].mxu1 }
 0x116   : > { %v762_v9 = vadd.f32 %v1684_v38, %v761_v7  ;;  %v826_v10 = vadd.f32 %v1684_v38, %v825_v8  ;;  %v1353_v11 = vpop.f32.mrb[6].mxu0  ;;  %v1369_v12 = vpop.f32.mrb[6].mxu1  ;;  %1403 = vmatprep.subr.bf16.mxu1 %v1402_v2 }
 0x117   : > { %v878_v13 = vmax.f32 %v770_v5, 0.0  ;;  %v773_v14 = vadd.f32 %v1353_v11, %v1684_v38  ;;  %v837_v15 = vadd.f32 %v1369_v12, %v1684_v38  ;;  %v764_v16 = vpop.f32.mrb[7].mxu0  ;;  %v828_v17 = vpop.f32.mrb[7].mxu1  ;;  %1405 = vmatpush3.bf16.msra.mxu1 %v1404_v1  ;;  %v894_v20 = vmax.f32 %v834_v6, 0.0 }
 0x118   : > { %v765_v18 = vadd.f32 %v1684_v38, %v764_v16  ;;  %v829_v19 = vadd.f32 %v1684_v38, %v828_v17  ;;  %1407 = vmatprep.subr.bf16.mxu1 %v1406_v0  ;;  %v876_v23 = vmax.f32 %v762_v9, 0.0  ;;  %v892_v24 = vmax.f32 %v826_v10, 0.0 }
 0x119   : > { %v879_v21 = vmax.f32 %v773_v14, 0.0  ;;  %v895_v22 = vmax.f32 %v837_v15, 0.0 }
 0x11a   : > { %v877_v25 = vmax.f32 %v765_v18, 0.0  ;;  %v893_v26 = vmax.f32 %v829_v19, 0.0 }
 0x11b   : > { %v1416_v27 = vpack.c.bf16 %v879_v21, %v878_v13  ;;  %v1414_v28 = vpack.c.bf16 %v895_v22, %v894_v20  ;;  %1409 = vmatpush3.bf16.msra.mxu1 %v1408_v63 }
 0x11c   : > { %v1412_v29 = vpack.c.bf16 %v877_v25, %v876_v23  ;;  %v1410_v30 = vpack.c.bf16 %v893_v26, %v892_v24  ;;  %v1356_v31 = vpop.f32.mrb[8].mxu0  ;;  %v1372_v32 = vpop.f32.mrb[8].mxu1  ;;  %v904_v25 = vld [vmem:[#allocation2] sm:$0xff] }
 0x11d   : > { %v786_v33 = vadd.f32 %v1356_v31, %v1684_v38  ;;  %v850_v34 = vadd.f32 %v1372_v32, %v1684_v38  ;;  %v777_v35 = vpop.f32.mrb[9].mxu0  ;;  %v841_v36 = vpop.f32.mrb[9].mxu1  ;;  %v1489_v31 = vld [vmem:[%s1772_s5 + $0x8] sm:$0xff] (!%p1262_p9)   ;;  %v986_v32 = vld [vmem:[%s1771_s4] sm:$0xf] (!%p1262_p9) }
 0x11e   : > { %v778_v37 = vadd.f32 %v1684_v38, %v777_v35  ;;  %v842_v39 = vadd.f32 %v1684_v38, %v841_v36  ;;  %v1357_v40 = vpop.f32.mrb[10].mxu0  ;;  %v1373_v41 = vpop.f32.mrb[10].mxu1  ;;  %1411 = vmatprep.subr.bf16.mxu1 %v1410_v30  ;;  %v1521_v30 = vmov (!%p1262_p9), 0.0   ;;  %v1492_v35 = vld [vmem:[%s1774_s7 + $0x8] sm:$0xff] (!%p1262_p9)  }
 0x11f   : > { %v882_v42 = vmax.f32 %v786_v33, 0.0  ;;  %v789_v43 = vadd.f32 %v1357_v40, %v1684_v38  ;;  %v853_v44 = vadd.f32 %v1373_v41, %v1684_v38  ;;  %v780_v45 = vpop.f32.mrb[11].mxu0  ;;  %v844_v46 = vpop.f32.mrb[11].mxu1  ;;  %1413 = vmatpush3.bf16.msra.mxu1 %v1412_v29  ;;  %v898_v49 = vmax.f32 %v850_v34, 0.0  ;;  %v1488_v29 = vld [vmem:[%s1772_s5] sm:$0xff] (!%p1262_p9)   ;;  %1378 = vmatprep.subr.bf16.mxu0 (!%p1262_p9), %v1521_v30 }
 0x120   : > { %v781_v47 = vadd.f32 %v1684_v38, %v780_v45  ;;  %v845_v48 = vadd.f32 %v1684_v38, %v844_v46  ;;  %1415 = vmatprep.subr.bf16.mxu1 %v1414_v28  ;;  %v880_v52 = vmax.f32 %v778_v37, 0.0  ;;  %v896_v53 = vmax.f32 %v842_v39, 0.0  ;;  %1379 = vmatpush3.bf16.msra.mxu0 (!%p1262_p9), %v1488_v29  ;;  %v1490_v33 = vld [vmem:[%s1774_s7] sm:$0xff] (!%p1262_p9)   ;;  %v1493_v39 = vld [vmem:[%s1775_s8 + $0x8] sm:$0xff] (!%p1262_p9)  }
 0x121   : > { %v883_v50 = vmax.f32 %v789_v43, 0.0  ;;  %v899_v51 = vmax.f32 %v853_v44, 0.0  ;;  %1382 = vmatprep.mubr.msk.bf16.mxu0 (!%p1262_p9), %vm1522_vm4, %v1521_v30  ;;  %1380 = vmatprep.subr.bf16.mxu0 (!%p1262_p9), %v1521_v30  ;;  %v1491_v34 = vld [vmem:[%s1775_s8] sm:$0xff] (!%p1262_p9)  }
 0x122   : > { %v881_v54 = vmax.f32 %v781_v47, 0.0  ;;  %v897_v55 = vmax.f32 %v845_v48, 0.0  ;;  %v1263_v41 = vld [vmem:[%s1773_s6] ss:$0 sm:$0xff] (!%p1262_p9) }
 0x123   : > { %v1424_v56 = vpack.c.bf16 %v883_v50, %v882_v42  ;;  %v1422_v57 = vpack.c.bf16 %v899_v51, %v898_v49  ;;  %1417 = vmatpush3.bf16.msra.mxu1 %v1416_v27 }
 0x124   : > { %v1420_v58 = vpack.c.bf16 %v881_v54, %v880_v52  ;;  %v1418_v59 = vpack.c.bf16 %v897_v55, %v896_v53  ;;  %v1360_v60 = vpop.f32.mrb[12].mxu0  ;;  %v1376_v61 = vpop.f32.mrb[12].mxu1  ;;  %1381 = vmatpush3.bf16.msra.mxu0 (!%p1262_p9), %v1489_v31  ;;  %v1273_v54 = vld [vmem:[%s1776_s9] ss:$0 sm:$0xff] (!%p1262_p9) }
 0x125   : > { %v802_v62 = vadd.f32 %v1360_v60, %v1684_v38  ;;  %v866_v63 = vadd.f32 %v1376_v61, %v1684_v38  ;;  %v793_v0 = vpop.f32.mrb[13].mxu0  ;;  %v857_v1 = vpop.f32.mrb[13].mxu1  ;;  %1394 = vmatprep.subr.bf16.mxu0 (!%p1262_p9), %v1521_v30 }
 0x126   : > { %v794_v2 = vadd.f32 %v1684_v38, %v793_v0  ;;  %v858_v3 = vadd.f32 %v1684_v38, %v857_v1  ;;  %v1361_v4 = vpop.f32.mrb[14].mxu0  ;;  %v1377_v5 = vpop.f32.mrb[14].mxu1  ;;  %1419 = vmatprep.subr.bf16.mxu1 %v1418_v59 }
 0x127   : > { %v886_v6 = vmax.f32 %v802_v62, 0.0  ;;  %v805_v7 = vadd.f32 %v1361_v4, %v1684_v38  ;;  %v869_v8 = vadd.f32 %v1377_v5, %v1684_v38  ;;  %v796_v9 = vpop.f32.mrb[15].mxu0  ;;  %v860_v10 = vpop.f32.mrb[15].mxu1  ;;  %1421 = vmatpush3.bf16.msra.mxu1 %v1420_v58  ;;  %v902_v13 = vmax.f32 %v866_v63, 0.0  ;;  %1383 = vmatmul.mubr.msk.bf16.vlgmr.msra.gmra.mrb[0].mxu0 (!%p1262_p9), %vm978_vm3, %v986_v32 }
 0x128   : > { %v797_v11 = vadd.f32 %v1684_v38, %v796_v9  ;;  %v861_v12 = vadd.f32 %v1684_v38, %v860_v10  ;;  %1423 = vmatprep.subr.bf16.mxu1 %v1422_v57  ;;  %v884_v16 = vmax.f32 %v794_v2, 0.0  ;;  %v900_v17 = vmax.f32 %v858_v3, 0.0  ;;  %v905_v38 = vld [vmem:[%s1768_s1] sm:$0xff]  ;;  %1398 = vmatprep.mubr.msk.bf16.mxu0 (!%p1262_p9), %vm1522_vm4, %v1521_v30 }
 0x129   : > { %v887_v14 = vmax.f32 %v805_v7, 0.0  ;;  %v903_v15 = vmax.f32 %v869_v8, 0.0  ;;  %1395 = vmatpush3.bf16.msra.mxu0 (!%p1262_p9), %v1490_v33 }
 0x12a   : > { %v885_v18 = vmax.f32 %v797_v11, 0.0  ;;  %v901_v19 = vmax.f32 %v861_v12, 0.0  ;;  %1396 = vmatprep.subr.bf16.mxu0 (!%p1262_p9), %v1521_v30 }
 0x12b   : > { %v1432_v20 = vpack.c.bf16 %v887_v14, %v886_v6  ;;  %v1430_v21 = vpack.c.bf16 %v903_v15, %v902_v13  ;;  %1425 = vmatpush3.bf16.msra.mxu1 %v1424_v56 }
 0x12c   : > { %v1428_v22 = vpack.c.bf16 %v885_v18, %v884_v16  ;;  %v1426_v23 = vpack.c.bf16 %v901_v19, %v900_v17 }
 0x12d   : > { %1397 = vmatpush3.bf16.msra.mxu0 (!%p1262_p9), %v1492_v35 }
 0x12e   : > { %1427 = vmatprep.subr.bf16.mxu1 %v1426_v23 }
 0x12f   : > { %1429 = vmatpush3.bf16.msra.mxu1 %v1428_v22 }
 0x130   : > { %1431 = vmatprep.subr.bf16.mxu1 %v1430_v21 }
 0x133   : > { %1433 = vmatpush3.bf16.msra.mxu1 %v1432_v20 }
 0x134   : > { %1386 = vmatprep.subr.bf16.mxu1 (!%p1262_p9), %v1521_v30 }
 0x136   : > { %972 = vmatmul.mubr.f32.vlgmr.msra.gmra.mrb[16].mxu1 %v905_v38 }
 0x137   : > { %1390 = vmatprep.mubr.msk.bf16.mxu1 (!%p1262_p9), %vm1522_vm4, %v1521_v30  ;;  %1387 = vmatpush3.bf16.msra.mxu1 (!%p1262_p9), %v1491_v34 }
 0x138   : > { %1388 = vmatprep.subr.bf16.mxu1 (!%p1262_p9), %v1521_v30 }
 0x13b   : > { %1389 = vmatpush3.bf16.msra.mxu1 (!%p1262_p9), %v1493_v39 }
 0x1fa   : > { %v1047_v42 = vpop.f32.mrb[0].mxu0 (!%p1262_p9) }
 0x1fb   : > { %v1048_v43 = vadd.f32 (!%p1262_p9), %v1263_v41, %v1047_v42  ;;  %v1384_v44 = vpop.f32.mrb[1].mxu0 (!%p1262_p9) }
 0x1fc   : > { %v1050_v45 = vpop.f32.mrb[2].mxu0 (!%p1262_p9) }
 0x1fd   : > { %1494 = vtanh.f32 (!%p1262_p9), %v1048_v43  ;;  %v1385_v46 = vpop.f32.mrb[3].mxu0 (!%p1262_p9) }
 0x207   : > { %v1495_v47 = vpop.eup (!%p1262_p9), %1494 }
 0x208   : > { %v1059_v48 = vpack.c.bf16 (!%p1262_p9), %v1495_v47, %v1495_v47 }
 0x209   : > { %v1328_v24 = vpop.f32.mrb[16].mxu1  ;;  %983 = sbr.rel (%p1262_p9) target bundleno = 756 (0x2f4), region = 109 }
 0x20a   : > { %v1329_v26 = vpop.f32.mrb[17].mxu1  ;;  %1391 = vmatmul.mubr.msk.bf16.vlgmr.msra.gmra.mrb[0].mxu1 (!%p1262_p9), %vm978_vm3, %v1059_v48 }
 0x20b   : > { %v1330_v27 = vadd.f32 %v1329_v26, %v1328_v24 }
 0x20d   : > { %v977_v28 = vadd.f32 %v1330_v27, %v904_v25 }
 0x20f   : > { %979 = vst.msk [vmem:[#allocation2] sm:$0xff] %vm978_vm3, %v977_v28 }
 0x216   : > { %v984_v36 = vld [vmem:[#allocation2] sm:$0xff] }
 0x217   : > { %v985_v37 = vmul.f32 0.00390625, %v984_v36 }
 0x219   : > { %v1054_v40 = vpack.c.bf16 %v985_v37, %v985_v37 }
 0x21b   : > { %1399 = vmatmul.mubr.msk.bf16.vlgmr.msra.gmra.mrb[4].mxu0 %vm978_vm3, %v1054_v40 }
 0x2dd   : > { %v1113_v53 = vpop.f32.mrb[0].mxu1 }
 0x2de   : > { %v1392_v56 = vpop.f32.mrb[1].mxu1 }
 0x2df   : > { %v1116_v57 = vpop.f32.mrb[2].mxu1 }
 0x2e0   : > { %v1393_v59 = vpop.f32.mrb[3].mxu1 }
 0x2ee   : > { %v1168_v49 = vpop.f32.mrb[4].mxu0 }
 0x2ef   : > { %v1400_v50 = vpop.f32.mrb[5].mxu0  ;;  %v1169_v55 = vadd.f32 %v1168_v49, %v1113_v53 }
 0x2f0   : > { %v1171_v51 = vpop.f32.mrb[6].mxu0 }
 0x2f1   : > { %v1401_v52 = vpop.f32.mrb[7].mxu0  ;;  %v1181_v58 = vadd.f32 %v1273_v54, %v1169_v55 }
 0x2f3   : > { %1182 = vst [vmem:[%s1777_s10] sm:$0xff] %v1181_v58 }
 0x2f4 PF: > { %p17_p10 = scmp.ge.s32.totalorder %s1595_s17, 4   ;;  %s1778_s13 = smov %s1514_s14 }
 0x2f5   : > { %s1779_s14 = smov %s1604_s20  ;;  %s1780_s15 = smov %s1595_s17 }
 0x2f6   :  { %19 = sbr.rel (!%p17_p10) target bundleno = 2 (0x2), region = 140 }

</bundles_post_ra>
